<compile_context>
chip_gen: v7x
topology: tpu7x:2x2x1
jax: 0.10.0
libtpu: 0.0.40
codegen_flags: <defaults>
</compile_context>

<pallas_src>
import functools

import jax
import jax.numpy as jnp
from jax.experimental import pallas as pl
from jax.experimental.pallas import tpu as pltpu


# ------------------------------- kernel ------------------------------------ #

def _rope_kernel(x_ref, cos_ref, sin_lo_ref, sin_hi_ref, o_ref, *, half):
    """out = x*cos + roll(x, +half)*sin_lo + roll(x, -half)*sin_hi.

    x_ref:      [ts, M, W]  (W = group*D lanes; rotation acts per D-sized group)
    cos_ref:    [ts, W]     cos(angle) on rope lanes, 1 on pass-through lanes
    sin_lo_ref: [ts, W]     -sin(angle) on lanes (j % D) <  half, 0 elsewhere
    sin_hi_ref: [ts, W]     +sin(angle) on lanes half <= (j % D) < d_rope, 0 elsewhere
    """
    x = x_ref[...]                                   # keep input dtype (no f32 copy)
    w = x.shape[-1]
    cos = cos_ref[...][:, None, :]                   # [ts, 1, W] -> broadcast over M
    if w == 2 * half:
        # Single head group, full-width rope: one roll by W/2 (self-inverse shift).
        sin = (sin_lo_ref[...] + sin_hi_ref[...])[:, None, :]
        rot = pltpu.roll(x, shift=half, axis=2)
        o_ref[...] = (x * cos + rot * sin).astype(o_ref.dtype)
    else:
        # rot_lo[j] = x[j + half]  (selected where (j % D) <  half, via sin_lo)
        # rot_hi[j] = x[j - half]  (selected where (j % D) >= half, via sin_hi)
        rot_lo = pltpu.roll(x, shift=w - half, axis=2)
        rot_hi = pltpu.roll(x, shift=half, axis=2)
        o_ref[...] = (x * cos
                      + rot_lo * sin_lo_ref[...][:, None, :]
                      + rot_hi * sin_hi_ref[...][:, None, :]).astype(o_ref.dtype)


# ------------------------------- helpers ------------------------------------ #

def _pick_head_group(bh, d):
    """Smallest g dividing B*H with (g*d) % 128 == 0, so blocks are lane-dense."""
    if d % 128 == 0:
        return 1
    for g in range(1, bh + 1):
        if bh % g == 0 and (g * d) % 128 == 0 and g * d <= 1024:
            return g
    return 1


def _hw_budget():
    """(target x-block bytes, vmem_limit_bytes), sized per TPU generation."""
    try:
        cap = pltpu.get_tpu_info().vmem_capacity_bytes
    except Exception:
        cap = 64 * 1024 * 1024
    if cap >= 96 * 1024 * 1024:          # v5e / v6e: 128 MiB physical VMEM
        return 4 << 20, 96 << 20
    return 2 << 20, 44 << 20             # v7x: 64 MiB physical VMEM


def _pick_seq_tile(S, row_bytes, target_bytes, min_steps=4):
    ts = max(8, min(2048, ((target_bytes // max(row_bytes, 1)) // 8) * 8))
    ts = min(ts, ((S + 7) // 8) * 8)
    # Keep a few grid steps so the 'parallel' seq axis can shard across both
    # v7x TensorCores instead of collapsing to a 1-2 step grid.
    if S >= min_steps * 8 and pl.cdiv(S, ts) < min_steps:
        ts = max(8, ((pl.cdiv(S, min_steps) + 7) // 8) * 8)
    return ts


def _build_caches(S, D, d_rope, base, group):
    """Full-width, sign-folded caches: pass-through lanes get cos=1, sin=0."""
    half = d_rope // 2
    theta = 1.0 / (base ** (jnp.arange(0, d_rope, 2, dtype=jnp.float32) / d_rope))
    ang = jnp.arange(S, dtype=jnp.float32)[:, None] * theta[None, :]      # [S, half]
    ang = jnp.concatenate([ang, ang], axis=1)                             # [S, d_rope]
    cos = jnp.cos(ang)
    sin = jnp.sin(ang)
    pad = D - d_rope
    if pad:
        cos = jnp.pad(cos, ((0, 0), (0, pad)), constant_values=1.0)
        sin = jnp.pad(sin, ((0, 0), (0, pad)), constant_values=0.0)
    lane = jnp.arange(D)
    sin_lo = jnp.where((lane < half)[None, :], -sin, 0.0)
    sin_hi = jnp.where(((lane >= half) & (lane < d_rope))[None, :], sin, 0.0)
    if group > 1:
        cos = jnp.tile(cos, (1, group))
        sin_lo = jnp.tile(sin_lo, (1, group))
        sin_hi = jnp.tile(sin_hi, (1, group))
    return cos, sin_lo, sin_hi


# ------------------------------- wrapper ------------------------------------ #

def rope_forward(x: jax.Array, d_rope: int, base: int = 10000) -> jax.Array:
    """x: [seq_len, batch, n_heads, d_model] -> same shape/dtype (RoPE on first d_rope)."""
    S, B, H, D = x.shape
    assert 0 < d_rope <= D and d_rope % 2 == 0
    half = d_rope // 2

    g = _pick_head_group(B * H, D)               # pack g heads into the lane dim
    M, W = (B * H) // g, g * D

    cos, sin_lo, sin_hi = _build_caches(S, D, d_rope, base, g)   # [S, W] f32, tiny
    x3 = x.reshape(S, M, W)                                      # free metadata reshape

    target_bytes, vmem_limit = _hw_budget()
    ts = _pick_seq_tile(S, M * W * x.dtype.itemsize, target_bytes)
    grid = (pl.cdiv(S, ts),)

    x_spec = pl.BlockSpec((ts, M, W), lambda i: (i, 0, 0))
    c_spec = pl.BlockSpec((ts, W), lambda i: (i, 0))

    out3 = pl.pallas_call(
        functools.partial(_rope_kernel, half=half),
        grid_spec=pltpu.PrefetchScalarGridSpec(
            num_scalar_prefetch=0,
            grid=grid,
            in_specs=[x_spec, c_spec, c_spec, c_spec],
            out_specs=x_spec,
        ),
        out_shape=jax.ShapeDtypeStruct((S, M, W), x.dtype),
        input_output_aliases={0: 0},             # RoPE is in-place; reuse x's HBM buffer
        compiler_params=pltpu.CompilerParams(
            dimension_semantics=("parallel",),   # seq tiles shard across v7x cores
            vmem_limit_bytes=vmem_limit,
        ),
    )(x3, cos, sin_lo, sin_hi)

    return out3.reshape(S, B, H, D)


# --------------------------- reference & test -------------------------------- #

def rope_reference(x: jax.Array, d_rope: int, base: int = 10000) -> jax.Array:
    """Pure-JAX reference mirroring the PyTorch module exactly."""
    S = x.shape[0]
    half = d_rope // 2
    theta = 1.0 / (base ** (jnp.arange(0, d_rope, 2, dtype=jnp.float32) / d_rope))
    idx_theta = jnp.arange(S, dtype=jnp.float32)[:, None] * theta[None, :]
    idx_theta2 = jnp.concatenate([idx_theta, idx_theta], axis=1)
    cos = jnp.cos(idx_theta2)[:, None, None, :]
    sin = jnp.sin(idx_theta2)[:, None, None, :]
    x_rope, x_pass = x[..., :d_rope], x[..., d_rope:]
    neg_half = jnp.concatenate([-x_rope[..., half:], x_rope[..., :half]], axis=-1)
    x_rope = x_rope * cos + neg_half * sin
    return jnp.concatenate([x_rope, x_pass], axis=-1)


if __name__ == "__main__":
    key = jax.random.PRNGKey(0)
    cases = [
        (8, 2, 4, 32, 16),     # partial rope + head packing (D=32 -> 128 lanes)
        (8, 2, 4, 32, 32),     # full-width rope + head packing
        (8, 1, 2, 128, 128),   # full-width rope, already lane-dense (single-roll path)
    ]
    for i, (S, B, H, D, d_rope) in enumerate(cases):
        x = jax.random.normal(jax.random.fold_in(key, i), (S, B, H, D), dtype=jnp.float32)
        ref = rope_reference(x, d_rope)
        out = jax.block_until_ready(rope_forward(x, d_rope))
        assert out.shape == (S, B, H, D)
        err = float(jnp.max(jnp.abs(out - ref)))
        assert jnp.allclose(out, ref, atol=1e-5, rtol=1e-5), (S, B, H, D, d_rope, err)
    print("KERNEL_OK")
</pallas_src>

<mosaic_0001>
module attributes {stable_mosaic.version = 11 : i64} {
  func.func @_rope_kernel(%arg0: i32, %arg1: memref<8x2x128xf32, #tpu.memory_space<vmem>>, %arg2: memref<8x128xf32, #tpu.memory_space<vmem>>, %arg3: memref<8x128xf32, #tpu.memory_space<vmem>>, %arg4: memref<8x128xf32, #tpu.memory_space<vmem>>, %arg5: memref<8x2x128xf32, #tpu.memory_space<vmem>>) attributes {dimension_semantics = [#tpu.dimension_semantics<parallel>], iteration_bounds = array<i64: 1>, scalar_prefetch = 0 : i64, scratch_operands = 0 : i64, tpu.core_type = #tpu.core_type<tc>, window_params = [{transform_indices = @transform_0, window_bounds = array<i64: 8, 2, 128>}, {transform_indices = @transform_1, window_bounds = array<i64: 8, 128>}, {transform_indices = @transform_2, window_bounds = array<i64: 8, 128>}, {transform_indices = @transform_3, window_bounds = array<i64: 8, 128>}, {transform_indices = @transform_4, window_bounds = array<i64: 8, 2, 128>}]} {
    %c0 = arith.constant 0 : index
    %c0_0 = arith.constant 0 : index
    %c0_1 = arith.constant 0 : index
    %0 = vector.load %arg1[%c0, %c0_0, %c0_1] : memref<8x2x128xf32, #tpu.memory_space<vmem>>, vector<8x2x128xf32>
    %c0_2 = arith.constant 0 : index
    %c0_3 = arith.constant 0 : index
    %1 = vector.load %arg2[%c0_2, %c0_3] : memref<8x128xf32, #tpu.memory_space<vmem>>, vector<8x128xf32>
    %2 = vector.shape_cast %1 : vector<8x128xf32> to vector<8x1x128xf32>
    %c120_i32 = arith.constant 120 : i32
    %3 = tpu.dynamic_rotate %0 by %c120_i32 dim 2 : vector<8x2x128xf32>, i32 -> vector<8x2x128xf32>
    %c8_i32 = arith.constant 8 : i32
    %4 = tpu.dynamic_rotate %0 by %c8_i32 dim 2 : vector<8x2x128xf32>, i32 -> vector<8x2x128xf32>
    %5 = vector.broadcast %2 : vector<8x1x128xf32> to vector<8x2x128xf32>
    %6 = arith.mulf %0, %5 : vector<8x2x128xf32>
    %c0_4 = arith.constant 0 : index
    %c0_5 = arith.constant 0 : index
    %7 = vector.load %arg3[%c0_4, %c0_5] : memref<8x128xf32, #tpu.memory_space<vmem>>, vector<8x128xf32>
    %8 = vector.shape_cast %7 : vector<8x128xf32> to vector<8x1x128xf32>
    %9 = vector.broadcast %8 : vector<8x1x128xf32> to vector<8x2x128xf32>
    %10 = arith.mulf %3, %9 : vector<8x2x128xf32>
    %11 = arith.addf %6, %10 : vector<8x2x128xf32>
    %c0_6 = arith.constant 0 : index
    %c0_7 = arith.constant 0 : index
    %12 = vector.load %arg4[%c0_6, %c0_7] : memref<8x128xf32, #tpu.memory_space<vmem>>, vector<8x128xf32>
    %13 = vector.shape_cast %12 : vector<8x128xf32> to vector<8x1x128xf32>
    %14 = vector.broadcast %13 : vector<8x1x128xf32> to vector<8x2x128xf32>
    %15 = arith.mulf %4, %14 : vector<8x2x128xf32>
    %16 = arith.addf %11, %15 : vector<8x2x128xf32>
    %c0_8 = arith.constant 0 : index
    %c0_9 = arith.constant 0 : index
    %c0_10 = arith.constant 0 : index
    %17 = vector.load %arg5[%c0_8, %c0_9, %c0_10] : memref<8x2x128xf32, #tpu.memory_space<vmem>>, vector<8x2x128xf32>
    tpu.vector_store %arg5[%c0_8, %c0_9, %c0_10], %16 {strides = array<i32>} : memref<8x2x128xf32, #tpu.memory_space<vmem>>, vector<8x2x128xf32>,
    return
  }
  func.func @transform_0(%arg0: i32) -> (i32, i32, i32) {
    %c0_i32 = arith.constant 0 : i32
    %c0_i32_0 = arith.constant 0 : i32
    %c0_i32_1 = arith.constant 0 : i32
    return %arg0, %c0_i32, %c0_i32_0 : i32, i32, i32
  }
  func.func @transform_1(%arg0: i32) -> (i32, i32) {
    %c0_i32 = arith.constant 0 : i32
    %c0_i32_0 = arith.constant 0 : i32
    return %arg0, %c0_i32 : i32, i32
  }
  func.func @transform_2(%arg0: i32) -> (i32, i32) {
    %c0_i32 = arith.constant 0 : i32
    %c0_i32_0 = arith.constant 0 : i32
    return %arg0, %c0_i32 : i32, i32
  }
  func.func @transform_3(%arg0: i32) -> (i32, i32) {
    %c0_i32 = arith.constant 0 : i32
    %c0_i32_0 = arith.constant 0 : i32
    return %arg0, %c0_i32 : i32, i32
  }
  func.func @transform_4(%arg0: i32) -> (i32, i32, i32) {
    %c0_i32 = arith.constant 0 : i32
    %c0_i32_0 = arith.constant 0 : i32
    %c0_i32_1 = arith.constant 0 : i32
    return %arg0, %c0_i32, %c0_i32_0 : i32, i32, i32
  }
}

</mosaic_0001>

<bundles_post_ra>
// kernel: tpu_custom_call.1
= control target key start
LH: loop header
LB: loop body
LE: loop exit
PB: predicated region body
PF: predicated region fallthrough
CT: control target
= control target key end

     0   :  { %9 = vsyncpa [#allocation3], 0  ;;  %s625_s0 = inlined_call_operand.hbm [shape: f32[8,2,128], index: 0, kind: input, shape index: {}, may-alias: {0,4}]   ;;  %s626_s1 = inlined_call_operand.vmem [shape: f32[8,128], index: 1, kind: input, shape index: {}]   ;;  %s627_s2 = inlined_call_operand.vmem [shape: f32[8,128], index: 2, kind: input, shape index: {}]   ;;  %s628_s3 = inlined_call_operand.vmem [shape: f32[8,128], index: 3, kind: input, shape index: {}]   ;;  %s629_s4 = inlined_call_operand.hbm [shape: f32[8,2,128], index: 4, kind: output, shape index: {}, may-alias: {0,4}]  }
   0x1   :  { %10 = vsyncpa [#allocation4], 0  ;;  %s468_s15 = smov [#allocation2]   ;;  %s420_s19 = scalar_lea.hbm %s625_s0, 256 }
   0x2   :  { %s16_s16 = sshll.u32 %s468_s15, 4  ;;  %p421_p0 = scmp.ne.s32.totalorder %s625_s0, %s420_s19  ;;  %s17_s16 = int_to_ptr.vmem [resolvable:$true] %s16_s16 }
   0x3   :  { %p424_p1 = scmp.lt.u32.totalorder %s420_s19, %s625_s0 }
   0x5   :  { %p426_p2 = pnand %p424_p1, %p421_p0 }
   0x7   :  { %429 = shalt.err (!%p426_p2)
}
   0x8   :  { %s430_s24 = scalar_lea.vmem %s17_s16, 256  ;;  %p435_p4 = scmp.lt.s32.totalorder %s17_s16, %s17_s16 }
   0x9   :  { %p431_p3 = scmp.ne.s32.totalorder %s17_s16, %s430_s24  ;;  %p436_p5 = scmp.lt.s32.totalorder %s430_s24, %s430_s24 }
   0xb   :  { %p437_p6 = por %p436_p5, %p435_p4 }
   0xd   :  { %p438_p7 = pnand %p437_p6, %p431_p3 }
   0xf   :  { %441 = shalt.err (!%p438_p7)
}
  0x10   :  { %s469_s25 = smov 32   ;;  %s470_s26 = smov 2  }
  0x11   :  { %22 = dma.hbm_to_vmem [thread:$0]  %s625_s0, 256, %s17_s16, [#allocation3], %s469_s25, %s469_s25, %s470_s26  }
  0x12   :  { %464 = dma.done.wait [#allocation3], 256  }
  0x13   :  { %465 = vsyncadd [#allocation3], 4294967040  ;;  %v515_v0 = vld [vmem:[#allocation2 + $0x4] sm:$0x3]  ;;  %v517_v1 = vld [vmem:[#allocation2] sm:$0x3]  ;;  %v46_v10 = vlaneseq }
  0x14   :  { %s471_s29 = smov 120   ;;  %v521_v2 = vld [vmem:[#allocation2 + $0x6] sm:$0x3]  ;;  %v523_v3 = vld [vmem:[#allocation2 + $0x2] sm:$0x3]  ;;  %s472_s0 = smov 8  }
  0x15   :  { %95 = vrot.lane.b32.xlu1 %v515_v0, %s471_s29  ;;  %91 = vrot.lane.b32.xlu0 %v517_v1, %s471_s29  ;;  %v527_v4 = vld [vmem:[#allocation2 + $0xa] sm:$0x3]  ;;  %v529_v5 = vld [vmem:[#allocation2 + $0x8] sm:$0x3]  ;;  %v533_v6 = vld [vmem:[#allocation2 + $0xe] sm:$0x3] }
  0x16   :  { %v535_v7 = vld [vmem:[#allocation2 + $0xc] sm:$0x3]  ;;  %v473_v8 = vmov 1966171168   ;;  %v47_v12 = vshrl.u32 %v46_v10, 7  ;;  %v40_v14 = vld [vmem:[%s626_s1] sm:$0xff] }
  0x17   :  { %v44_v9 = vunpack.c.l.s4 %v473_v8  ;;  %v42_v16 = vcombine.high %v40_v14, %v40_v14  ;;  %v171_v18 = vld [vmem:[%s627_s2] sm:$0xff]  ;;  %s474_s1 = smov [#allocation5]  }
  0x18   :  { %v278_v21 = vld [vmem:[%s628_s3] sm:$0xff]  ;;  %v561_v22 = vsub.s32 0, %v47_v12  ;;  %v173_v24 = vcombine.high %v171_v18, %v171_v18  ;;  %s398_s2 = sshll.u32 %s474_s1, 4  ;;  %s399_s2 = int_to_ptr.vmem [resolvable:$true] %s398_s2 }
  0x19   :  { %97 = vrot.lane.b32.xlu1 %v521_v2, %s471_s29  ;;  %93 = vrot.lane.b32.xlu0 %v523_v3, %s471_s29  ;;  %v45_v11 = vunpack.c.0.s8 %v44_v9  ;;  %v280_v39 = vcombine.high %v278_v21, %v278_v21  ;;  %s442_s3 = scalar_lea.vmem %s399_s2, 256  ;;  %p447_p9 = scmp.lt.s32.totalorder %s399_s2, %s399_s2 }
  0x1a   :  { %p443_p8 = scmp.ne.s32.totalorder %s399_s2, %s442_s3  ;;  %p448_p10 = scmp.lt.s32.totalorder %s442_s3, %s442_s3 }
  0x1b   :  { %v547_v13 = vsub.s32 %v45_v11, %v47_v12 }
  0x1c   :  { %p449_p11 = por %p448_p10, %p447_p9 }
  0x1d   :  { %101 = vrot.lane.b32.xlu1 %v527_v4, %s471_s29  ;;  %99 = vrot.lane.b32.xlu0 %v529_v5, %s471_s29  ;;  %v49_v15 = vrot.slane %v40_v14, %v547_v13  ;;  %v56_v20 = vrot.slane %v42_v16, %v547_v13  ;;  %v180_v23 = vrot.slane %v171_v18, %v547_v13 }
  0x1e   :  { %v287_v29 = vrot.slane %v278_v21, %v547_v13  ;;  %v187_v34 = vrot.slane %v173_v24, %v547_v13  ;;  %v294_v54 = vrot.slane %v280_v39, %v547_v13  ;;  %p450_p12 = pnand %p449_p11, %p443_p8 }
  0x1f   :  { %v65_v17 = vrot.slane %v49_v15, %v547_v13  ;;  %v57_v19 = vcombine.high %v49_v15, %v49_v15  ;;  %v188_v28 = vcombine.high %v180_v23, %v180_v23  ;;  %v58_v31 = vcombine.high %v56_v20, %v56_v20 }
  0x20   :  { %v72_v32 = vrot.slane %v56_v20, %v547_v13  ;;  %v196_v36 = vrot.slane %v180_v23, %v547_v13  ;;  %v295_v41 = vcombine.high %v287_v29, %v287_v29  ;;  %v189_v48 = vcombine.high %v187_v34, %v187_v34 }
  0x21   :  { %105 = vrot.lane.b32.xlu1 %v533_v6, %s471_s29  ;;  %103 = vrot.lane.b32.xlu0 %v535_v7, %s471_s29  ;;  %v87_v25 = vcombine.high %v65_v17, %v65_v17  ;;  %v79_v30 = vrot.slane %v57_v19, %v547_v13  ;;  %v126_v33 = vrot.slane %v65_v17, %v561_v22 }
  0x22   :  { %v210_v40 = vrot.slane %v188_v28, %v547_v13  ;;  %v86_v44 = vrot.slane %v58_v31, %v547_v13  ;;  %v142_v45 = vrot.slane %v72_v32, %v561_v22  ;;  %v88_v47 = vcombine.high %v72_v32, %v72_v32 }
  0x23   :  { %v134_v35 = vrot.slane %v87_v25, %v561_v22  ;;  %v89_v42 = vcombine.high %v79_v30, %v79_v30  ;;  %v130_v43 = vrot.slane %v79_v30, %v561_v22  ;;  %v163_v46 = vmul.f32 %v126_v33, %v517_v1 }
  0x24   :  { %v218_v50 = vcombine.high %v196_v36, %v196_v36  ;;  %v225_v51 = vrot.slane %v196_v36, %v561_v22  ;;  %v220_v55 = vcombine.high %v210_v40, %v210_v40  ;;  %v229_v56 = vrot.slane %v210_v40, %v561_v22 }
  0x25   :  { %109 = vrot.lane.b32.xlu1 %v523_v3, %s472_s0  ;;  %107 = vrot.lane.b32.xlu0 %v517_v1, %s472_s0  ;;  %v165_v49 = vmul.f32 %v134_v35, %v515_v0  ;;  %v317_v57 = vrot.slane %v295_v41, %v547_v13  ;;  %v303_v58 = vrot.slane %v287_v29, %v547_v13 }
  0x26   :  { %v138_v59 = vrot.slane %v89_v42, %v561_v22  ;;  %v164_v60 = vmul.f32 %v130_v43, %v523_v3  ;;  %v146_v61 = vrot.slane %v86_v44, %v561_v22  ;;  %v167_v62 = vmul.f32 %v142_v45, %v529_v5 }
  0x27   :  { %v90_v63 = vcombine.high %v86_v44, %v86_v44  ;;  %v203_v1 = vrot.slane %v187_v34, %v547_v13  ;;  %v327_v8 = vcombine.high %v317_v57, %v317_v57  ;;  %v233_v9 = vrot.slane %v218_v50, %v561_v22 }
  0x28   :  { %v325_v14 = vcombine.high %v303_v58, %v303_v58  ;;  %v296_v15 = vcombine.high %v294_v54, %v294_v54  ;;  %v237_v16 = vrot.slane %v220_v55, %v561_v22  ;;  %v336_v17 = vrot.slane %v317_v57, %v561_v22 }
  0x29   :  { %113 = vrot.lane.b32.xlu1 %v521_v2, %s472_s0  ;;  %111 = vrot.lane.b32.xlu0 %v515_v0, %s472_s0  ;;  %v217_v0 = vrot.slane %v189_v48, %v547_v13  ;;  %v166_v18 = vmul.f32 %v138_v59, %v521_v2  ;;  %v150_v19 = vrot.slane %v88_v47, %v561_v22 }
  0x2a   :  { %v219_v21 = vcombine.high %v203_v1, %v203_v1  ;;  %v241_v24 = vrot.slane %v203_v1, %v561_v22  ;;  %v344_v25 = vrot.slane %v327_v8, %v561_v22  ;;  %v340_v32 = vrot.slane %v325_v14, %v561_v22 }
  0x2b   :  { %v221_v20 = vcombine.high %v217_v0, %v217_v0  ;;  %v245_v23 = vrot.slane %v217_v0, %v561_v22  ;;  %v324_v2 = vrot.slane %v296_v15, %v547_v13  ;;  %v154_v39 = vrot.slane %v90_v63, %v561_v22 }
  0x2c   :  { %v249_v41 = vrot.slane %v219_v21, %v561_v22 }
  0x2d   :  { %117 = vrot.lane.b32.xlu1 %v527_v4, %s472_s0  ;;  %115 = vrot.lane.b32.xlu0 %v529_v5, %s472_s0  ;;  %v332_v5 = vrot.slane %v303_v58, %v561_v22  ;;  %v253_v40 = vrot.slane %v221_v20, %v561_v22  ;;  %v352_v47 = vrot.slane %v324_v2, %v561_v22 }
  0x2e   :  { %v328_v48 = vcombine.high %v324_v2, %v324_v2  ;;  %v170_v55 = vmul.f32 %v154_v39, %v533_v6 }
  0x31   :  { %121 = vrot.lane.b32.xlu1 %v533_v6, %s472_s0  ;;  %119 = vrot.lane.b32.xlu0 %v535_v7, %s472_s0 }
  0x87   :  { %v96_v26 = vpop.permute.xlu1 %95  ;;  %v92_v27 = vpop.permute.xlu0 %91 }
  0x88   :  { %v262_v10 = vmul.f32 %v225_v51, %v92_v27  ;;  %v310_v27 = vrot.slane %v294_v54, %v547_v13  ;;  %v264_v28 = vmul.f32 %v233_v9, %v96_v26 }
  0x8a   :  { %v270_v29 = vadd.f32 %v262_v10, %v163_v46  ;;  %v348_v43 = vrot.slane %v310_v27, %v561_v22  ;;  %v326_v44 = vcombine.high %v310_v27, %v310_v27  ;;  %v272_v50 = vadd.f32 %v264_v28, %v165_v49 }
  0x8b   :  { %v98_v37 = vpop.permute.xlu1 %97  ;;  %v94_v38 = vpop.permute.xlu0 %93 }
  0x8c   :  { %v263_v3 = vmul.f32 %v229_v56, %v94_v38  ;;  %v265_v33 = vmul.f32 %v237_v16, %v98_v37  ;;  %v168_v38 = vmul.f32 %v146_v61, %v527_v4  ;;  %v169_v56 = vmul.f32 %v150_v19, %v535_v7 }
  0x8d   :  { %v360_v61 = vrot.slane %v328_v48, %v561_v22  ;;  %v356_v63 = vrot.slane %v326_v44, %v561_v22 }
  0x8e   :  { %v271_v34 = vadd.f32 %v263_v3, %v164_v60  ;;  %v273_v4 = vadd.f32 %v265_v33, %v166_v18 }
  0x8f   :  { %v102_v52 = vpop.permute.xlu1 %101  ;;  %v100_v53 = vpop.permute.xlu0 %99 }
  0x90   :  { %v267_v45 = vmul.f32 %v245_v23, %v102_v52  ;;  %v266_v46 = vmul.f32 %v241_v24, %v100_v53 }
  0x92   :  { %v275_v59 = vadd.f32 %v267_v45, %v168_v38  ;;  %v274_v52 = vadd.f32 %v266_v46, %v167_v62 }
  0x93   :  { %v106_v11 = vpop.permute.xlu1 %105  ;;  %v104_v12 = vpop.permute.xlu0 %103 }
  0x94   :  { %v269_v49 = vmul.f32 %v253_v40, %v106_v11  ;;  %v268_v0 = vmul.f32 %v249_v41, %v104_v12 }
  0x96   :  { %v277_v14 = vadd.f32 %v269_v49, %v170_v55  ;;  %v276_v62 = vadd.f32 %v268_v0, %v169_v56 }
  0x97   :  { %v110_v30 = vpop.permute.xlu1 %109  ;;  %v108_v31 = vpop.permute.xlu0 %107 }
  0x98   :  { %v370_v35 = vmul.f32 %v336_v17, %v110_v30  ;;  %v369_v36 = vmul.f32 %v332_v5, %v108_v31 }
  0x9a   :  { %v378_v26 = vadd.f32 %v370_v35, %v271_v34  ;;  %v377_v42 = vadd.f32 %v369_v36, %v270_v29 }
  0x9b   :  { %v114_v13 = vpop.permute.xlu1 %113  ;;  %v112_v37 = vpop.permute.xlu0 %111 }
  0x9c   :  { %386 = vst [vmem:[#allocation5 + $0x2] sm:$0x3] %v378_v26  ;;  %385 = vst [vmem:[#allocation5] sm:$0x3] %v377_v42  ;;  %v372_v51 = vmul.f32 %v344_v25, %v114_v13  ;;  %v371_v54 = vmul.f32 %v340_v32, %v112_v37 }
  0x9e   :  { %v380_v57 = vadd.f32 %v372_v51, %v273_v4  ;;  %v379_v58 = vadd.f32 %v371_v54, %v272_v50 }
  0x9f   :  { %v118_v53 = vpop.permute.xlu1 %117  ;;  %v116_v60 = vpop.permute.xlu0 %115 }
  0xa0   :  { %388 = vst [vmem:[#allocation5 + $0x6] sm:$0x3] %v380_v57  ;;  %387 = vst [vmem:[#allocation5 + $0x4] sm:$0x3] %v379_v58  ;;  %v374_v1 = vmul.f32 %v352_v47, %v118_v53  ;;  %v373_v8 = vmul.f32 %v348_v43, %v116_v60 }
  0xa2   :  { %v382_v9 = vadd.f32 %v374_v1, %v275_v59  ;;  %v381_v6 = vadd.f32 %v373_v8, %v274_v52 }
  0xa3   :  { %v122_v10 = vpop.permute.xlu1 %121  ;;  %v120_v7 = vpop.permute.xlu0 %119 }
  0xa4   :  { %390 = vst [vmem:[#allocation5 + $0xa] sm:$0x3] %v382_v9  ;;  %389 = vst [vmem:[#allocation5 + $0x8] sm:$0x3] %v381_v6  ;;  %v376_v15 = vmul.f32 %v360_v61, %v122_v10  ;;  %v375_v16 = vmul.f32 %v356_v63, %v120_v7 }
  0xa6   :  { %v384_v3 = vadd.f32 %v376_v15, %v277_v14  ;;  %v383_v22 = vadd.f32 %v375_v16, %v276_v62 }
  0xa8   :  { %392 = vst [vmem:[#allocation5 + $0xe] sm:$0x3] %v384_v3  ;;  %391 = vst [vmem:[#allocation5 + $0xc] sm:$0x3] %v383_v22 }
  0xa9   :  { %453 = shalt.err (!%p450_p12)
}
  0xaa   :  { %s454_s12 = scalar_lea.hbm %s629_s4, 256 }
  0xab   :  { %p455_p13 = scmp.ne.s32.totalorder %s629_s4, %s454_s12  ;;  %p458_p0 = scmp.lt.u32.totalorder %s454_s12, %s629_s4 }
  0xad   :  { %p460_p1 = pnand %p458_p0, %p455_p13 }
  0xaf   :  { %463 = shalt.err (!%p460_p1)
}
  0xb0   :  { %404 = dma.vmem_to_hbm [thread:$0]  %s399_s2, 256, %s629_s4, [#allocation4], %s469_s25, %s469_s25, %s470_s26  }
  0xb1   :  { %466 = dma.done.wait [#allocation4], 256  }
  0xb2   :  { %467 = vsyncadd [#allocation4], 4294967040 }
  0xb3   :  { %408 = vsyncpa [#allocation3], 1 }
  0xb4   :  { %409 = vsyncpa [#allocation4], 1 }

</bundles_post_ra>
